<compile_context>
chip_gen: v7x
topology: tpu7x:2x2x1
jax: 0.10.0
libtpu: 0.0.40
codegen_flags: <defaults>
</compile_context>

<pallas_src>
import functools

import jax
import jax.numpy as jnp
from jax import lax
from jax.experimental import pallas as pl
from jax.experimental.pallas import tpu as pltpu


# ---------------------------------------------------------------------------
# Kernels
# ---------------------------------------------------------------------------

def _critic_kernel_fused(s_ref, a_ref,
                         w1s_ref, w1a_ref, b1_ref,
                         w2_ref, b2_ref,
                         w3t_ref, b3t_ref,
                         q_ref):
    """Twin-head critic, hidden_width < 128: heads packed block-diagonally."""
    # Layer 1: s/a concat folded into a row-split of the fused [d_in, 2H] weight.
    h = (jnp.dot(s_ref[...], w1s_ref[...], preferred_element_type=jnp.float32)
         + jnp.dot(a_ref[...], w1a_ref[...], preferred_element_type=jnp.float32)
         + b1_ref[...])
    h = jnp.maximum(h, 0.0).astype(w2_ref.dtype)

    # Layer 2: block-diagonal(W2, W5) keeps the two heads independent.
    g = jnp.dot(h, w2_ref[...], preferred_element_type=jnp.float32) + b2_ref[...]
    g = jnp.maximum(g, 0.0).astype(w3t_ref.dtype)

    # Layer 3, lane-dense transposed output: [2, tb] = W3t @ g^T (NT matmul).
    qt = lax.dot_general(w3t_ref[...], g,
                         dimension_numbers=(((1,), (1,)), ((), ())),
                         preferred_element_type=jnp.float32)
    q_ref[...] = (qt + b3t_ref[...]).astype(q_ref.dtype)


def _critic_kernel_split(s_ref, a_ref,
                         w1s_ref, w1a_ref, b1_ref,
                         w2_ref, b2_ref, w5_ref, b5_ref,
                         w3t_ref, w6t_ref, b36_ref,
                         q_ref, *, hidden):
    """Twin-head critic, hidden_width a multiple of 128: per-head weights."""
    h = (jnp.dot(s_ref[...], w1s_ref[...], preferred_element_type=jnp.float32)
         + jnp.dot(a_ref[...], w1a_ref[...], preferred_element_type=jnp.float32)
         + b1_ref[...])
    h = jnp.maximum(h, 0.0).astype(w2_ref.dtype)
    h1 = h[:, :hidden]          # static lane slices at multiples of 128
    h2 = h[:, hidden:]

    g1 = jnp.dot(h1, w2_ref[...], preferred_element_type=jnp.float32) + b2_ref[...]
    g1 = jnp.maximum(g1, 0.0).astype(w3t_ref.dtype)
    g2 = jnp.dot(h2, w5_ref[...], preferred_element_type=jnp.float32) + b5_ref[...]
    g2 = jnp.maximum(g2, 0.0).astype(w6t_ref.dtype)

    qt1 = lax.dot_general(w3t_ref[...], g1,
                          dimension_numbers=(((1,), (1,)), ((), ())),
                          preferred_element_type=jnp.float32)
    qt2 = lax.dot_general(w6t_ref[...], g2,
                          dimension_numbers=(((1,), (1,)), ((), ())),
                          preferred_element_type=jnp.float32)
    qt = jnp.concatenate([qt1, qt2], axis=0) + b36_ref[...]
    q_ref[...] = qt.astype(q_ref.dtype)


# ---------------------------------------------------------------------------
# Wrapper
# ---------------------------------------------------------------------------

_FUSED_NPARAMS = 7    # block-diagonal packing (hidden_width < 128)
_SPLIT_NPARAMS = 10   # per-head layer-2/3 packing (hidden_width % 128 == 0)
_VMEM_BUDGET = 24 * 1024 * 1024   # stay under the 32 MiB default scoped limit


def _round_up(x, m):
    return ((x + m - 1) // m) * m


def _pick_batch_tile(padded_b, row_bytes, param_bytes):
    """Largest batch tile that (a) divides the padded batch, (b) leaves the
    'parallel' grid axis with >= 2 steps when possible (both v7x TensorCores),
    and (c) fits the VMEM budget."""
    for tb in (2048, 1024, 512, 256, 128):
        if padded_b % tb:
            continue
        if padded_b >= 256 and tb > padded_b // 2:
            continue
        if param_bytes + tb * row_bytes > _VMEM_BUDGET:
            continue
        return tb
    return 128


def _param_spec(arr, single_buffer):
    if single_buffer:
        # Constant index_map -> the block never changes; one buffer suffices.
        return pl.BlockSpec(arr.shape, lambda i: (0, 0),
                            pipeline_mode=pl.Buffered(1))
    return pl.BlockSpec(arr.shape, lambda i: (0, 0))


@functools.partial(jax.jit, static_argnums=(3,))
def _critic_forward_impl(s, a, packed, single_buffer_weights):
    B, state_dim = s.shape
    action_dim = a.shape[1]
    fused = len(packed) == _FUSED_NPARAMS
    H2 = packed[2].shape[1]            # b1 is [1, 2H]
    H = H2 // 2
    compute_dtype = packed[0].dtype
    act_bytes = jnp.dtype(compute_dtype).itemsize

    # Pad the batch to a multiple of 128: every tile is (8,128)-aligned, the
    # batch axis stays pipelined / megacore-shardable (no whole-array block).
    Bp = _round_up(B, 128)
    if Bp != B:
        s = jnp.pad(s, ((0, Bp - B), (0, 0)))
        a = jnp.pad(a, ((0, Bp - B), (0, 0)))
    s = s.astype(compute_dtype)
    a = a.astype(compute_dtype)

    param_bytes = sum(int(p.size) * p.dtype.itemsize for p in packed)
    # Rough per-batch-row VMEM: double-buffered inputs + f32 output + in-kernel
    # activations (f32 + compute-dtype copies of the [*, 2H] hidden state).
    row_bytes = (2 * (state_dim + action_dim) * act_bytes + 2 * 2 * 4
                 + 2 * H2 * (4 + act_bytes))
    tb = _pick_batch_tile(Bp, row_bytes, param_bytes)
    grid = (Bp // tb,)

    in_specs = [pl.BlockSpec((tb, state_dim), lambda i: (i, 0)),
                pl.BlockSpec((tb, action_dim), lambda i: (i, 0))]
    in_specs += [_param_spec(p, single_buffer_weights) for p in packed]
    # Lane-dense transposed output: q1 in row 0, q2 in row 1.
    out_spec = pl.BlockSpec((2, tb), lambda i: (0, i))

    d_in = state_dim + action_dim
    l2_flops = H2 * H2 if fused else 2 * H * H
    flops = 2 * Bp * (d_in * H2 + l2_flops + H2 * 2)
    io_bytes = (s.size + a.size) * act_bytes + Bp * 2 * 4
    cost = pl.CostEstimate(flops=flops, transcendentals=0,
                           bytes_accessed=param_bytes + io_bytes)

    if fused:
        kernel = _critic_kernel_fused
    else:
        kernel = functools.partial(_critic_kernel_split, hidden=H)

    q = pl.pallas_call(
        kernel,
        out_shape=jax.ShapeDtypeStruct((2, Bp), jnp.float32),
        grid=grid,
        in_specs=in_specs,
        out_specs=out_spec,
        compiler_params=pltpu.CompilerParams(
            dimension_semantics=("parallel",)),
        cost_estimate=cost,
    )(s, a, *packed)

    return q[0, :B][:, None], q[1, :B][:, None]


_SINGLE_BUFFER_WEIGHTS_OK = True


def critic_forward(s, a, packed):
    """Fused twin-Q critic forward. Returns (q1, q2), each [B, 1] float32."""
    global _SINGLE_BUFFER_WEIGHTS_OK
    if _SINGLE_BUFFER_WEIGHTS_OK:
        try:
            return _critic_forward_impl(s, a, packed, True)
        except Exception:
            # pipeline_mode=pl.Buffered(1) unsupported on this jax/libtpu:
            # fall back to default double-buffered weight specs.
            _SINGLE_BUFFER_WEIGHTS_OK = False
    return _critic_forward_impl(s, a, packed, False)


# ---------------------------------------------------------------------------
# Parameter construction / packing / reference
# ---------------------------------------------------------------------------

def init_critic_params(key, state_dim, action_dim, hidden_width):
    """Deterministic init mimicking nn.Linear default (uniform +-1/sqrt(fan_in)).

    Weights stored as [in, out]; biases stored as [1, out]."""
    d_in = state_dim + action_dim
    dims = [(d_in, hidden_width), (hidden_width, hidden_width), (hidden_width, 1),
            (d_in, hidden_width), (hidden_width, hidden_width), (hidden_width, 1)]
    params = []
    for (fan_in, fan_out) in dims:
        key, kw, kb = jax.random.split(key, 3)
        bound = 1.0 / jnp.sqrt(jnp.float32(fan_in))
        w = jax.random.uniform(kw, (fan_in, fan_out), jnp.float32, -bound, bound)
        b = jax.random.uniform(kb, (1, fan_out), jnp.float32, -bound, bound)
        params.append(w)
        params.append(b)
    return tuple(params)


def pack_critic_params(params, state_dim, compute_dtype=jnp.float32):
    """Pack the 6 Linear layers into fused twin-head tensors (host-side, once).

    Weights are cast to `compute_dtype` (e.g. bf16 on v6e/v7x); biases stay f32
    because the kernel does bias-add / ReLU in f32."""
    (w1, b1, w2, b2, w3, b3, w4, b4, w5, b5, w6, b6) = params
    H = w1.shape[1]
    cd = compute_dtype

    w14 = jnp.concatenate([w1, w4], axis=1)                    # [d_in, 2H]
    w14_s = w14[:state_dim, :].astype(cd)
    w14_a = w14[state_dim:, :].astype(cd)
    b14 = jnp.concatenate([b1, b4], axis=1).astype(jnp.float32)       # [1, 2H]
    b36t = jnp.concatenate([b3, b6], axis=1).reshape(2, 1).astype(jnp.float32)

    if H >= 128 and H % 128 == 0:
        # Split heads: no zero-multiplication waste, static lane slices in-kernel.
        return (w14_s, w14_a, b14,
                w2.astype(cd), b2.astype(jnp.float32),
                w5.astype(cd), b5.astype(jnp.float32),
                w3.T.astype(cd), w6.T.astype(cd), b36t)

    # Small hidden width: block-diagonal fusion (sub-128 lane slicing would cost
    # more than the multiplied zeros).
    z = jnp.zeros((H, H), w2.dtype)
    w25 = jnp.block([[w2, z], [z, w5]]).astype(cd)             # [2H, 2H]
    b25 = jnp.concatenate([b2, b5], axis=1).astype(jnp.float32)
    zc = jnp.zeros((H, 1), w3.dtype)
    w36t = jnp.block([[w3, zc], [zc, w6]]).T.astype(cd)        # [2, 2H]
    return (w14_s, w14_a, b14, w25, b25, w36t, b36t)


def critic_forward_ref(s, a, params):
    """Pure-JAX reference matching the PyTorch Critic.forward."""
    (w1, b1, w2, b2, w3, b3, w4, b4, w5, b5, w6, b6) = params
    sa = jnp.concatenate([s, a], axis=1)
    q1 = jnp.maximum(sa @ w1 + b1, 0.0)
    q1 = jnp.maximum(q1 @ w2 + b2, 0.0)
    q1 = q1 @ w3 + b3
    q2 = jnp.maximum(sa @ w4 + b4, 0.0)
    q2 = jnp.maximum(q2 @ w5 + b5, 0.0)
    q2 = q2 @ w6 + b6
    return q1, q2


# ---------------------------------------------------------------------------
# Self-test
# ---------------------------------------------------------------------------

if __name__ == "__main__":
    key = jax.random.PRNGKey(0)

    # --- Test 1: tiny shapes, f32, block-diagonal (hidden < 128) path. -------
    B, state_dim, action_dim, hidden_width = 8, 12, 4, 32
    key, ks, ka, kp = jax.random.split(key, 4)
    s = jax.random.normal(ks, (B, state_dim), jnp.float32)
    a = jax.random.normal(ka, (B, action_dim), jnp.float32)
    params = init_critic_params(kp, state_dim, action_dim, hidden_width)
    packed = pack_critic_params(params, state_dim, compute_dtype=jnp.float32)

    q1, q2 = critic_forward(s, a, packed)
    jax.block_until_ready((q1, q2))
    q1_ref, q2_ref = critic_forward_ref(s, a, params)
    assert q1.shape == (B, 1) and q2.shape == (B, 1)
    assert jnp.allclose(q1, q1_ref, atol=1e-5, rtol=1e-5)
    assert jnp.allclose(q2, q2_ref, atol=1e-5, rtol=1e-5)

    # --- Test 2: ragged batch, bf16 weights/activations, split-head path. ----
    B2, hidden_width2 = 200, 128
    key, ks2, ka2, kp2 = jax.random.split(key, 4)
    s2 = jax.random.normal(ks2, (B2, state_dim), jnp.float32)
    a2 = jax.random.normal(ka2, (B2, action_dim), jnp.float32)
    params2 = init_critic_params(kp2, state_dim, action_dim, hidden_width2)
    packed2 = pack_critic_params(params2, state_dim, compute_dtype=jnp.bfloat16)

    q1b, q2b = critic_forward(s2, a2, packed2)
    jax.block_until_ready((q1b, q2b))
    q1b_ref, q2b_ref = critic_forward_ref(s2, a2, params2)
    assert q1b.shape == (B2, 1) and q2b.shape == (B2, 1)
    assert jnp.allclose(q1b, q1b_ref, atol=5e-2, rtol=5e-2)
    assert jnp.allclose(q2b, q2b_ref, atol=5e-2, rtol=5e-2)

    print("KERNEL_OK")
</pallas_src>

<mosaic_0001>
module attributes {stable_mosaic.version = 11 : i64} {
  func.func @_critic_kernel_fused(%arg0: i32, %arg1: memref<128x12xf32, #tpu.memory_space<vmem>>, %arg2: memref<128x4xf32, #tpu.memory_space<vmem>>, %arg3: memref<12x64xf32, #tpu.memory_space<vmem>>, %arg4: memref<4x64xf32, #tpu.memory_space<vmem>>, %arg5: memref<1x64xf32, #tpu.memory_space<vmem>>, %arg6: memref<64x64xf32, #tpu.memory_space<vmem>>, %arg7: memref<1x64xf32, #tpu.memory_space<vmem>>, %arg8: memref<2x64xf32, #tpu.memory_space<vmem>>, %arg9: memref<2x1xf32, #tpu.memory_space<vmem>>, %arg10: memref<2x128xf32, #tpu.memory_space<vmem>>) attributes {dimension_semantics = [#tpu.dimension_semantics<parallel>], iteration_bounds = array<i64: 1>, scalar_prefetch = 0 : i64, scratch_operands = 0 : i64, tpu.core_type = #tpu.core_type<tc>, window_params = [{transform_indices = @transform_0, window_bounds = array<i64: 128, 12>}, {transform_indices = @transform_1, window_bounds = array<i64: 128, 4>}, {pipeline_mode = #tpu.pipeline_mode<synchronous>, transform_indices = @transform_2, window_bounds = array<i64: 12, 64>}, {pipeline_mode = #tpu.pipeline_mode<synchronous>, transform_indices = @transform_3, window_bounds = array<i64: 4, 64>}, {pipeline_mode = #tpu.pipeline_mode<synchronous>, transform_indices = @transform_4, window_bounds = array<i64: 1, 64>}, {pipeline_mode = #tpu.pipeline_mode<synchronous>, transform_indices = @transform_5, window_bounds = array<i64: 64, 64>}, {pipeline_mode = #tpu.pipeline_mode<synchronous>, transform_indices = @transform_6, window_bounds = array<i64: 1, 64>}, {pipeline_mode = #tpu.pipeline_mode<synchronous>, transform_indices = @transform_7, window_bounds = array<i64: 2, 64>}, {pipeline_mode = #tpu.pipeline_mode<synchronous>, transform_indices = @transform_8, window_bounds = array<i64: 2, 1>}, {transform_indices = @transform_9, window_bounds = array<i64: 2, 128>}]} {
    %c0 = arith.constant 0 : index
    %c0_0 = arith.constant 0 : index
    %0 = vector.load %arg1[%c0, %c0_0] : memref<128x12xf32, #tpu.memory_space<vmem>>, vector<128x12xf32>
    %c0_1 = arith.constant 0 : index
    %c0_2 = arith.constant 0 : index
    %1 = vector.load %arg3[%c0_1, %c0_2] : memref<12x64xf32, #tpu.memory_space<vmem>>, vector<12x64xf32>
    %cst = arith.constant dense<0.000000e+00> : vector<128x64xf32>
    %2 = tpu.matmul %0, %1, %cst {dimension_numbers = #tpu.dot_dimension_numbers<[1], [0], [0], [1], [0, 0, 1, 1], [], []>} : vector<128x12xf32>, vector<12x64xf32>, vector<128x64xf32> -> vector<128x64xf32>
    %c0_3 = arith.constant 0 : index
    %c0_4 = arith.constant 0 : index
    %3 = vector.load %arg2[%c0_3, %c0_4] : memref<128x4xf32, #tpu.memory_space<vmem>>, vector<128x4xf32>
    %c0_5 = arith.constant 0 : index
    %c0_6 = arith.constant 0 : index
    %4 = vector.load %arg4[%c0_5, %c0_6] : memref<4x64xf32, #tpu.memory_space<vmem>>, vector<4x64xf32>
    %cst_7 = arith.constant dense<0.000000e+00> : vector<128x64xf32>
    %5 = tpu.matmul %3, %4, %cst_7 {dimension_numbers = #tpu.dot_dimension_numbers<[1], [0], [0], [1], [0, 0, 1, 1], [], []>} : vector<128x4xf32>, vector<4x64xf32>, vector<128x64xf32> -> vector<128x64xf32>
    %6 = arith.addf %2, %5 : vector<128x64xf32>
    %c0_8 = arith.constant 0 : index
    %c0_9 = arith.constant 0 : index
    %7 = vector.load %arg5[%c0_8, %c0_9] : memref<1x64xf32, #tpu.memory_space<vmem>>, vector<1x64xf32>
    %8 = vector.broadcast %7 : vector<1x64xf32> to vector<128x64xf32>
    %9 = arith.addf %6, %8 : vector<128x64xf32>
    %cst_10 = arith.constant 0.000000e+00 : f32
    %10 = vector.broadcast %cst_10 : f32 to vector<128x64xf32>
    %11 = arith.maximumf %9, %10 : vector<128x64xf32>
    %c0_11 = arith.constant 0 : index
    %c0_12 = arith.constant 0 : index
    %12 = vector.load %arg6[%c0_11, %c0_12] : memref<64x64xf32, #tpu.memory_space<vmem>>, vector<64x64xf32>
    %cst_13 = arith.constant dense<0.000000e+00> : vector<128x64xf32>
    %13 = tpu.matmul %11, %12, %cst_13 {dimension_numbers = #tpu.dot_dimension_numbers<[1], [0], [0], [1], [0, 0, 1, 1], [], []>} : vector<128x64xf32>, vector<64x64xf32>, vector<128x64xf32> -> vector<128x64xf32>
    %c0_14 = arith.constant 0 : index
    %c0_15 = arith.constant 0 : index
    %14 = vector.load %arg7[%c0_14, %c0_15] : memref<1x64xf32, #tpu.memory_space<vmem>>, vector<1x64xf32>
    %15 = vector.broadcast %14 : vector<1x64xf32> to vector<128x64xf32>
    %16 = arith.addf %13, %15 : vector<128x64xf32>
    %cst_16 = arith.constant 0.000000e+00 : f32
    %17 = vector.broadcast %cst_16 : f32 to vector<128x64xf32>
    %18 = arith.maximumf %16, %17 : vector<128x64xf32>
    %c0_17 = arith.constant 0 : index
    %c0_18 = arith.constant 0 : index
    %19 = vector.load %arg8[%c0_17, %c0_18] : memref<2x64xf32, #tpu.memory_space<vmem>>, vector<2x64xf32>
    %cst_19 = arith.constant dense<0.000000e+00> : vector<2x128xf32>
    %20 = tpu.matmul %19, %18, %cst_19 {dimension_numbers = #tpu.dot_dimension_numbers<[1], [1], [0], [0], [0, 0, 1, 0], [], []>} : vector<2x64xf32>, vector<128x64xf32>, vector<2x128xf32> -> vector<2x128xf32>
    %c0_20 = arith.constant 0 : index
    %c0_21 = arith.constant 0 : index
    %21 = vector.load %arg9[%c0_20, %c0_21] : memref<2x1xf32, #tpu.memory_space<vmem>>, vector<2x1xf32>
    %22 = vector.broadcast %21 : vector<2x1xf32> to vector<2x128xf32>
    %23 = arith.addf %20, %22 : vector<2x128xf32>
    %c0_22 = arith.constant 0 : index
    %c0_23 = arith.constant 0 : index
    %24 = vector.load %arg10[%c0_22, %c0_23] : memref<2x128xf32, #tpu.memory_space<vmem>>, vector<2x128xf32>
    tpu.vector_store %arg10[%c0_22, %c0_23], %23 {strides = array<i32>} : memref<2x128xf32, #tpu.memory_space<vmem>>, vector<2x128xf32>,
    return
  }
  func.func @transform_0(%arg0: i32) -> (i32, i32) {
    %c0_i32 = arith.constant 0 : i32
    %c0_i32_0 = arith.constant 0 : i32
    return %arg0, %c0_i32 : i32, i32
  }
  func.func @transform_1(%arg0: i32) -> (i32, i32) {
    %c0_i32 = arith.constant 0 : i32
    %c0_i32_0 = arith.constant 0 : i32
    return %arg0, %c0_i32 : i32, i32
  }
  func.func @transform_2(%arg0: i32) -> (i32, i32) {
    %c0_i32 = arith.constant 0 : i32
    %c0_i32_0 = arith.constant 0 : i32
    %c0_i32_1 = arith.constant 0 : i32
    return %c0_i32, %c0_i32_0 : i32, i32
  }
  func.func @transform_3(%arg0: i32) -> (i32, i32) {
    %c0_i32 = arith.constant 0 : i32
    %c0_i32_0 = arith.constant 0 : i32
    %c0_i32_1 = arith.constant 0 : i32
    return %c0_i32, %c0_i32_0 : i32, i32
  }
  func.func @transform_4(%arg0: i32) -> (i32, i32) {
    %c0_i32 = arith.constant 0 : i32
    %c0_i32_0 = arith.constant 0 : i32
    %c0_i32_1 = arith.constant 0 : i32
    return %c0_i32, %c0_i32_0 : i32, i32
  }
  func.func @transform_5(%arg0: i32) -> (i32, i32) {
    %c0_i32 = arith.constant 0 : i32
    %c0_i32_0 = arith.constant 0 : i32
    %c0_i32_1 = arith.constant 0 : i32
    return %c0_i32, %c0_i32_0 : i32, i32
  }
  func.func @transform_6(%arg0: i32) -> (i32, i32) {
    %c0_i32 = arith.constant 0 : i32
    %c0_i32_0 = arith.constant 0 : i32
    %c0_i32_1 = arith.constant 0 : i32
    return %c0_i32, %c0_i32_0 : i32, i32
  }
  func.func @transform_7(%arg0: i32) -> (i32, i32) {
    %c0_i32 = arith.constant 0 : i32
    %c0_i32_0 = arith.constant 0 : i32
    %c0_i32_1 = arith.constant 0 : i32
    return %c0_i32, %c0_i32_0 : i32, i32
  }
  func.func @transform_8(%arg0: i32) -> (i32, i32) {
    %c0_i32 = arith.constant 0 : i32
    %c0_i32_0 = arith.constant 0 : i32
    %c0_i32_1 = arith.constant 0 : i32
    return %c0_i32, %c0_i32_0 : i32, i32
  }
  func.func @transform_9(%arg0: i32) -> (i32, i32) {
    %c0_i32 = arith.constant 0 : i32
    %c0_i32_0 = arith.constant 0 : i32
    return %c0_i32, %arg0 : i32, i32
  }
}

module attributes {stable_mosaic.version = 11 : i64} {
  func.func @_critic_kernel_fused(%arg0: i32, %arg1: memref<128x12xf32, #tpu.memory_space<vmem>>, %arg2: memref<128x4xf32, #tpu.memory_space<vmem>>, %arg3: memref<12x64xf32, #tpu.memory_space<vmem>>, %arg4: memref<4x64xf32, #tpu.memory_space<vmem>>, %arg5: memref<1x64xf32, #tpu.memory_space<vmem>>, %arg6: memref<64x64xf32, #tpu.memory_space<vmem>>, %arg7: memref<1x64xf32, #tpu.memory_space<vmem>>, %arg8: memref<2x64xf32, #tpu.memory_space<vmem>>, %arg9: memref<2x1xf32, #tpu.memory_space<vmem>>, %arg10: memref<2x128xf32, #tpu.memory_space<vmem>>) attributes {dimension_semantics = [#tpu.dimension_semantics<parallel>], iteration_bounds = array<i64: 1>, scalar_prefetch = 0 : i64, scratch_operands = 0 : i64, tpu.core_type = #tpu.core_type<tc>, window_params = [{transform_indices = @transform_0, window_bounds = array<i64: 128, 12>}, {transform_indices = @transform_1, window_bounds = array<i64: 128, 4>}, {pipeline_mode = #tpu.pipeline_mode<synchronous>, transform_indices = @transform_2, window_bounds = array<i64: 12, 64>}, {pipeline_mode = #tpu.pipeline_mode<synchronous>, transform_indices = @transform_3, window_bounds = array<i64: 4, 64>}, {pipeline_mode = #tpu.pipeline_mode<synchronous>, transform_indices = @transform_4, window_bounds = array<i64: 1, 64>}, {pipeline_mode = #tpu.pipeline_mode<synchronous>, transform_indices = @transform_5, window_bounds = array<i64: 64, 64>}, {pipeline_mode = #tpu.pipeline_mode<synchronous>, transform_indices = @transform_6, window_bounds = array<i64: 1, 64>}, {pipeline_mode = #tpu.pipeline_mode<synchronous>, transform_indices = @transform_7, window_bounds = array<i64: 2, 64>}, {pipeline_mode = #tpu.pipeline_mode<synchronous>, transform_indices = @transform_8, window_bounds = array<i64: 2, 1>}, {transform_indices = @transform_9, window_bounds = array<i64: 2, 128>}]} {
    %c0 = arith.constant 0 : index
    %c0_0 = arith.constant 0 : index
    %0 = vector.load %arg1[%c0, %c0_0] : memref<128x12xf32, #tpu.memory_space<vmem>>, vector<128x12xf32>
    %c0_1 = arith.constant 0 : index
    %c0_2 = arith.constant 0 : index
    %1 = vector.load %arg3[%c0_1, %c0_2] : memref<12x64xf32, #tpu.memory_space<vmem>>, vector<12x64xf32>
    %cst = arith.constant dense<0.000000e+00> : vector<128x64xf32>
    %2 = tpu.matmul %0, %1, %cst {dimension_numbers = #tpu.dot_dimension_numbers<[1], [0], [0], [1], [0, 0, 1, 1], [], []>} : vector<128x12xf32>, vector<12x64xf32>, vector<128x64xf32> -> vector<128x64xf32>
    %c0_3 = arith.constant 0 : index
    %c0_4 = arith.constant 0 : index
    %3 = vector.load %arg2[%c0_3, %c0_4] : memref<128x4xf32, #tpu.memory_space<vmem>>, vector<128x4xf32>
    %c0_5 = arith.constant 0 : index
    %c0_6 = arith.constant 0 : index
    %4 = vector.load %arg4[%c0_5, %c0_6] : memref<4x64xf32, #tpu.memory_space<vmem>>, vector<4x64xf32>
    %cst_7 = arith.constant dense<0.000000e+00> : vector<128x64xf32>
    %5 = tpu.matmul %3, %4, %cst_7 {dimension_numbers = #tpu.dot_dimension_numbers<[1], [0], [0], [1], [0, 0, 1, 1], [], []>} : vector<128x4xf32>, vector<4x64xf32>, vector<128x64xf32> -> vector<128x64xf32>
    %6 = arith.addf %2, %5 : vector<128x64xf32>
    %c0_8 = arith.constant 0 : index
    %c0_9 = arith.constant 0 : index
    %7 = vector.load %arg5[%c0_8, %c0_9] : memref<1x64xf32, #tpu.memory_space<vmem>>, vector<1x64xf32>
    %8 = vector.broadcast %7 : vector<1x64xf32> to vector<128x64xf32>
    %9 = arith.addf %6, %8 : vector<128x64xf32>
    %cst_10 = arith.constant 0.000000e+00 : f32
    %10 = vector.broadcast %cst_10 : f32 to vector<128x64xf32>
    %11 = arith.maximumf %9, %10 : vector<128x64xf32>
    %c0_11 = arith.constant 0 : index
    %c0_12 = arith.constant 0 : index
    %12 = vector.load %arg6[%c0_11, %c0_12] : memref<64x64xf32, #tpu.memory_space<vmem>>, vector<64x64xf32>
    %cst_13 = arith.constant dense<0.000000e+00> : vector<128x64xf32>
    %13 = tpu.matmul %11, %12, %cst_13 {dimension_numbers = #tpu.dot_dimension_numbers<[1], [0], [0], [1], [0, 0, 1, 1], [], []>} : vector<128x64xf32>, vector<64x64xf32>, vector<128x64xf32> -> vector<128x64xf32>
    %c0_14 = arith.constant 0 : index
    %c0_15 = arith.constant 0 : index
    %14 = vector.load %arg7[%c0_14, %c0_15] : memref<1x64xf32, #tpu.memory_space<vmem>>, vector<1x64xf32>
    %15 = vector.broadcast %14 : vector<1x64xf32> to vector<128x64xf32>
    %16 = arith.addf %13, %15 : vector<128x64xf32>
    %cst_16 = arith.constant 0.000000e+00 : f32
    %17 = vector.broadcast %cst_16 : f32 to vector<128x64xf32>
    %18 = arith.maximumf %16, %17 : vector<128x64xf32>
    %c0_17 = arith.constant 0 : index
    %c0_18 = arith.constant 0 : index
    %19 = vector.load %arg8[%c0_17, %c0_18] : memref<2x64xf32, #tpu.memory_space<vmem>>, vector<2x64xf32>
    %cst_19 = arith.constant dense<0.000000e+00> : vector<2x128xf32>
    %20 = tpu.matmul %19, %18, %cst_19 {dimension_numbers = #tpu.dot_dimension_numbers<[1], [1], [0], [0], [0, 0, 1, 0], [], []>} : vector<2x64xf32>, vector<128x64xf32>, vector<2x128xf32> -> vector<2x128xf32>
    %c0_20 = arith.constant 0 : index
    %c0_21 = arith.constant 0 : index
    %21 = vector.load %arg9[%c0_20, %c0_21] : memref<2x1xf32, #tpu.memory_space<vmem>>, vector<2x1xf32>
    %22 = vector.broadcast %21 : vector<2x1xf32> to vector<2x128xf32>
    %23 = arith.addf %20, %22 : vector<2x128xf32>
    %c0_22 = arith.constant 0 : index
    %c0_23 = arith.constant 0 : index
    %24 = vector.load %arg10[%c0_22, %c0_23] : memref<2x128xf32, #tpu.memory_space<vmem>>, vector<2x128xf32>
    tpu.vector_store %arg10[%c0_22, %c0_23], %23 {strides = array<i32>} : memref<2x128xf32, #tpu.memory_space<vmem>>, vector<2x128xf32>,
    return
  }
  func.func @transform_0(%arg0: i32) -> (i32, i32) {
    %c0_i32 = arith.constant 0 : i32
    %c0_i32_0 = arith.constant 0 : i32
    return %arg0, %c0_i32 : i32, i32
  }
  func.func @transform_1(%arg0: i32) -> (i32, i32) {
    %c0_i32 = arith.constant 0 : i32
    %c0_i32_0 = arith.constant 0 : i32
    return %arg0, %c0_i32 : i32, i32
  }
  func.func @transform_2(%arg0: i32) -> (i32, i32) {
    %c0_i32 = arith.constant 0 : i32
    %c0_i32_0 = arith.constant 0 : i32
    %c0_i32_1 = arith.constant 0 : i32
    return %c0_i32, %c0_i32_0 : i32, i32
  }
  func.func @transform_3(%arg0: i32) -> (i32, i32) {
    %c0_i32 = arith.constant 0 : i32
    %c0_i32_0 = arith.constant 0 : i32
    %c0_i32_1 = arith.constant 0 : i32
    return %c0_i32, %c0_i32_0 : i32, i32
  }
  func.func @transform_4(%arg0: i32) -> (i32, i32) {
    %c0_i32 = arith.constant 0 : i32
    %c0_i32_0 = arith.constant 0 : i32
    %c0_i32_1 = arith.constant 0 : i32
    return %c0_i32, %c0_i32_0 : i32, i32
  }
  func.func @transform_5(%arg0: i32) -> (i32, i32) {
    %c0_i32 = arith.constant 0 : i32
    %c0_i32_0 = arith.constant 0 : i32
    %c0_i32_1 = arith.constant 0 : i32
    return %c0_i32, %c0_i32_0 : i32, i32
  }
  func.func @transform_6(%arg0: i32) -> (i32, i32) {
    %c0_i32 = arith.constant 0 : i32
    %c0_i32_0 = arith.constant 0 : i32
    %c0_i32_1 = arith.constant 0 : i32
    return %c0_i32, %c0_i32_0 : i32, i32
  }
  func.func @transform_7(%arg0: i32) -> (i32, i32) {
    %c0_i32 = arith.constant 0 : i32
    %c0_i32_0 = arith.constant 0 : i32
    %c0_i32_1 = arith.constant 0 : i32
    return %c0_i32, %c0_i32_0 : i32, i32
  }
  func.func @transform_8(%arg0: i32) -> (i32, i32) {
    %c0_i32 = arith.constant 0 : i32
    %c0_i32_0 = arith.constant 0 : i32
    %c0_i32_1 = arith.constant 0 : i32
    return %c0_i32, %c0_i32_0 : i32, i32
  }
  func.func @transform_9(%arg0: i32) -> (i32, i32) {
    %c0_i32 = arith.constant 0 : i32
    %c0_i32_0 = arith.constant 0 : i32
    return %c0_i32, %arg0 : i32, i32
  }
}

</mosaic_0001>

<bundles_post_ra>
// kernel: _critic_forward_impl.1
= control target key start
LH: loop header
LB: loop body
LE: loop exit
PB: predicated region body
PF: predicated region fallthrough
CT: control target
= control target key end

     0   :  { %vm116_vm0 = vcmask 1043456   ;;  %vm67_vm1 = vcmask 31744   ;;  %vm1209_vm2 = vmmov 1   ;;  %vm265_vm4 = vcmask 97280   ;;  %s1487_s3 = inlined_call_operand.vmem [shape: f32[4,64], index: 3, kind: input, shape index: {}]   ;;  %s1488_s1 = inlined_call_operand.vmem [shape: f32[128,4], index: 1, kind: input, shape index: {}]   ;;  %s1489_s2 = inlined_call_operand.vmem [shape: f32[12,64], index: 2, kind: input, shape index: {}]   ;;  %s1490_s5 = inlined_call_operand.vmem [shape: f32[64,64], index: 5, kind: input, shape index: {}]   ;;  %s1491_s0 = inlined_call_operand.vmem [shape: f32[128,12], index: 0, kind: input, shape index: {}]   ;;  %s1492_s4 = inlined_call_operand.vmem [shape: f32[1,64], index: 4, kind: input, shape index: {}]   ;;  %s1493_s8 = inlined_call_operand.vmem [shape: f32[2,1], index: 8, kind: input, shape index: {}]   ;;  %s1494_s6 = inlined_call_operand.vmem [shape: f32[1,64], index: 6, kind: input, shape index: {}]   ;;  %s1495_s7 = inlined_call_operand.vmem [shape: f32[2,64], index: 7, kind: input, shape index: {}]   ;;  %s1496_s9 = inlined_call_operand.vmem [shape: f32[2,128], index: 9, kind: output, shape index: {}]  }
   0x1   :  { %v66_v0 = vld [vmem:[%s1487_s3] sm:$0xf]  ;;  %v51_v2 = vld [vmem:[%s1488_s1 + $0x8] sm:$0xff]  ;;  %vm1134_vm3 = vmpackc.low %vm116_vm0, %vm1209_vm2  ;;  %vm516_vm5 = vcmask 523264   ;;  %vm1211_vm6 = vmmov 0  }
   0x2   :  { %v50_v1 = vld [vmem:[%s1488_s1] sm:$0xff]  ;;  %1004 = vmatprep.subr.msk.mxu0 %vm116_vm0, %v66_v0  ;;  %v49_v4 = vld [vmem:[%s1489_s2 + $0x8] sm:$0xf]  ;;  %v52_v6 = vld [vmem:[%s1488_s1 + $0x10] sm:$0xff] }
   0x3   :  { %1006 = vmatprep.mubr.msk.f32.mxu0 %vm67_vm1, %v50_v1  ;;  %v48_v3 = vld [vmem:[%s1489_s2] sm:$0xff]  ;;  %1005 = vmatpush3.msk.msra.mxu0 %vm116_vm0, %v66_v0  ;;  %v53_v7 = vld [vmem:[%s1488_s1 + $0x18] sm:$0xff]  ;;  %v55_v9 = vld [vmem:[%s1488_s1 + $0x28] sm:$0xff] }
   0x4   :  { %v1133_v5 = vpack.c.bf16 %v49_v4, %v48_v3  ;;  %1007 = vmatmul.mubr.msk.f32.vlgmr.msra.gmra.mrb[0].mxu0 %vm67_vm1, %v51_v2  ;;  %v54_v8 = vld [vmem:[%s1488_s1 + $0x20] sm:$0xff]  ;;  %v56_v10 = vld [vmem:[%s1488_s1 + $0x30] sm:$0xff]  ;;  %v57_v11 = vld [vmem:[%s1488_s1 + $0x38] sm:$0xff] }
   0x5   :  { %1009 = vmatprep.mubr.msk.f32.mxu0 %vm67_vm1, %v52_v6  ;;  %v501_v12 = vld [vmem:[%s1490_s5] sm:$0xff]  ;;  %v502_v13 = vld [vmem:[%s1490_s5 + $0x8] sm:$0xff]  ;;  %v503_v14 = vld [vmem:[%s1490_s5 + $0x10] sm:$0xff] }
   0x6   :  { %1135 = vmatprep.subr.msk.bf16.mxu0 %vm1134_vm3, %v1133_v5  ;;  %v58_v15 = vld [vmem:[%s1488_s1 + $0x40] sm:$0xff]  ;;  %v1139_v16 = vpack.c.bf16 %v502_v13, %v501_v12  ;;  %v504_v17 = vld [vmem:[%s1490_s5 + $0x18] sm:$0xff]  ;;  %v506_v20 = vld [vmem:[%s1490_s5 + $0x28] sm:$0xff] }
   0x7   :  { %1138 = vmatpush3.bf16.msk.msra.mxu0 %vm1134_vm3, %v1133_v5  ;;  %v1143_v18 = vpack.c.bf16 %v504_v17, %v503_v14  ;;  %v505_v19 = vld [vmem:[%s1490_s5 + $0x20] sm:$0xff]  ;;  %v59_v21 = vld [vmem:[%s1488_s1 + $0x48] sm:$0xff]  ;;  %v60_v22 = vld [vmem:[%s1488_s1 + $0x50] sm:$0xff] }
   0x8   :  { %1010 = vmatmul.mubr.msk.f32.gmra.mrb[2].mxu0 %vm67_vm1, %v53_v7  ;;  %1140 = vmatprep.subr.bf16.mxu1 %v1139_v16  ;;  %v1147_v23 = vpack.c.bf16 %v506_v20, %v505_v19  ;;  %v61_v24 = vld [vmem:[%s1488_s1 + $0x58] sm:$0xff]  ;;  %v62_v25 = vld [vmem:[%s1488_s1 + $0x60] sm:$0xff]  ;;  %v63_v26 = vld [vmem:[%s1488_s1 + $0x68] sm:$0xff] }
   0x9   :  { %1012 = vmatprep.mubr.msk.f32.mxu0 %vm67_vm1, %v54_v8  ;;  %1142 = vmatpush3.bf16.msra.mxu1 %v1139_v16  ;;  %v64_v27 = vld [vmem:[%s1488_s1 + $0x70] sm:$0xff]  ;;  %v65_v28 = vld [vmem:[%s1488_s1 + $0x78] sm:$0xff]  ;;  %v32_v29 = vld [vmem:[%s1491_s0] sm:$0xff] }
   0xa   :  { %1144 = vmatprep.subr.bf16.mxu1 %v1143_v18  ;;  %v33_v30 = vld [vmem:[%s1491_s0 + $0x8] sm:$0xff]  ;;  %v34_v31 = vld [vmem:[%s1491_s0 + $0x10] sm:$0xff]  ;;  %v35_v32 = vld [vmem:[%s1491_s0 + $0x18] sm:$0xff] }
   0xb   :  { %v36_v33 = vld [vmem:[%s1491_s0 + $0x20] sm:$0xff]  ;;  %v37_v34 = vld [vmem:[%s1491_s0 + $0x28] sm:$0xff]  ;;  %v38_v35 = vld [vmem:[%s1491_s0 + $0x30] sm:$0xff] }
   0xc   :  { %1013 = vmatmul.mubr.msk.f32.gmra.mrb[4].mxu0 %vm67_vm1, %v55_v9  ;;  %v39_v36 = vld [vmem:[%s1491_s0 + $0x38] sm:$0xff]  ;;  %v40_v37 = vld [vmem:[%s1491_s0 + $0x40] sm:$0xff]  ;;  %v41_v38 = vld [vmem:[%s1491_s0 + $0x48] sm:$0xff] }
   0xd   :  { %1015 = vmatprep.mubr.msk.f32.mxu0 %vm67_vm1, %v56_v10  ;;  %1146 = vmatpush3.bf16.msra.mxu1 %v1143_v18  ;;  %v42_v39 = vld [vmem:[%s1491_s0 + $0x50] sm:$0xff]  ;;  %v43_v40 = vld [vmem:[%s1491_s0 + $0x58] sm:$0xff]  ;;  %v44_v41 = vld [vmem:[%s1491_s0 + $0x60] sm:$0xff] }
   0xe   :  { %1148 = vmatprep.subr.bf16.mxu1 %v1147_v23  ;;  %v45_v42 = vld [vmem:[%s1491_s0 + $0x68] sm:$0xff]  ;;  %v46_v43 = vld [vmem:[%s1491_s0 + $0x70] sm:$0xff]  ;;  %v47_v44 = vld [vmem:[%s1491_s0 + $0x78] sm:$0xff] }
   0xf   :  { %v507_v45 = vld [vmem:[%s1490_s5 + $0x30] sm:$0xff]  ;;  %v508_v46 = vld [vmem:[%s1490_s5 + $0x38] sm:$0xff]  ;;  %v893_v48 = vld [vmem:[%s1492_s4] ss:$0 sm:$0xff] }
  0x10   :  { %1016 = vmatmul.mubr.msk.f32.gmra.mrb[6].mxu0 %vm67_vm1, %v57_v11  ;;  %v1151_v47 = vpack.c.bf16 %v508_v46, %v507_v45  ;;  %vm1453_vm7 = vmpackc.low %vm516_vm5, %vm516_vm5 }
  0x11   :  { %1018 = vmatprep.mubr.msk.f32.mxu0 %vm67_vm1, %v58_v15  ;;  %1150 = vmatpush3.bf16.msra.mxu1 %v1147_v23 }
  0x12   :  { %1152 = vmatprep.subr.bf16.mxu1 %v1151_v47 }
  0x14   :  { %1019 = vmatmul.mubr.msk.f32.gmra.mrb[8].mxu0 %vm67_vm1, %v59_v21 }
  0x15   :  { %1021 = vmatprep.mubr.msk.f32.mxu0 %vm67_vm1, %v60_v22  ;;  %1154 = vmatpush3.bf16.msra.mxu1 %v1151_v47 }
  0x18   :  { %1022 = vmatmul.mubr.msk.f32.gmra.mrb[10].mxu0 %vm67_vm1, %v61_v24 }
  0x19   :  { %1024 = vmatprep.mubr.msk.f32.mxu0 %vm67_vm1, %v62_v25 }
  0x1c   :  { %1025 = vmatmul.mubr.msk.f32.gmra.mrb[12].mxu0 %vm67_vm1, %v63_v26 }
  0x1d   :  { %1027 = vmatprep.mubr.msk.f32.mxu0 %vm67_vm1, %v64_v27 }
  0x20   :  { %1028 = vmatmul.mubr.msk.f32.gmra.mrb[14].mxu0 %vm67_vm1, %v65_v28 }
  0x21   :  { %1034 = vmatprep.mubr.msk.f32.mxu0 %vm265_vm4, %v32_v29 }
  0x24   :  { %1035 = vmatmul.mubr.msk.f32.vlgmr.msra.gmra.mrb[0].mxu0 %vm265_vm4, %v33_v30 }
  0x25   :  { %1037 = vmatprep.mubr.msk.f32.mxu0 %vm265_vm4, %v34_v31 }
  0x28   :  { %1038 = vmatmul.mubr.msk.f32.gmra.mrb[2].mxu0 %vm265_vm4, %v35_v32 }
  0x29   :  { %1040 = vmatprep.mubr.msk.f32.mxu0 %vm265_vm4, %v36_v33  ;;  %v1210_v33 = vmov 0.0|0.0  }
  0x2a   :  { %1155 = vmatprep.subr.bf16.mxu1 %v1210_v33 }
  0x2c   :  { %1041 = vmatmul.mubr.msk.f32.gmra.mrb[4].mxu0 %vm265_vm4, %v37_v34  ;;  %v1212_v34 = vmov 0.0  }
  0x2d   :  { %1043 = vmatprep.mubr.msk.f32.mxu0 %vm265_vm4, %v38_v35  ;;  %v1213_v35 = vmov 0  }
  0x2e   :  { %1208 = vset.pattern.permute.xlu0 %v1213_v35 }
  0x30   :  { %1044 = vmatmul.mubr.msk.f32.gmra.mrb[6].mxu0 %vm265_vm4, %v39_v36  ;;  %v727_v36 = vld [vmem:[%s1493_s8] sm:$0x3] }
  0x31   :  { %1046 = vmatprep.mubr.msk.f32.mxu0 %vm265_vm4, %v40_v37  ;;  %730 = vperm.xlu0 %1208, %v727_v36   ;;  %v894_v37 = vld [vmem:[%s1494_s6] ss:$0 sm:$0xff] }
  0x34   :  { %1047 = vmatmul.mubr.msk.f32.gmra.mrb[8].mxu0 %vm265_vm4, %v41_v38 }
  0x35   :  { %1049 = vmatprep.mubr.msk.f32.mxu0 %vm265_vm4, %v42_v39 }
  0x38   :  { %1050 = vmatmul.mubr.msk.f32.gmra.mrb[10].mxu0 %vm265_vm4, %v43_v40 }
  0x39   :  { %1052 = vmatprep.mubr.msk.f32.mxu0 %vm265_vm4, %v44_v41 }
  0x3c   :  { %1053 = vmatmul.mubr.msk.f32.gmra.mrb[12].mxu0 %vm265_vm4, %v45_v42 }
  0x3d   :  { %1055 = vmatprep.mubr.msk.f32.mxu0 %vm265_vm4, %v46_v43 }
  0x40   :  { %1056 = vmatmul.mubr.msk.f32.gmra.mrb[14].mxu0 %vm265_vm4, %v47_v44 }
  0xf7   :  { %v1036_v49 = vpop.f32.mrb[0].mxu0 }
  0xf8   :  { %v470_v50 = vadd.f32 %v1036_v49, %v893_v48  ;;  %v383_v51 = vpop.f32.mrb[1].mxu0 }
  0xf9   :  { %v469_v52 = vadd.f32 %v893_v48, %v383_v51 }
  0xfa   :  { %v486_v55 = vmax.f32 %v470_v50, 0.0 }
  0xfb   :  { %v485_v53 = vmax.f32 %v469_v52, 0.0  ;;  %v1039_v54 = vpop.f32.mrb[2].mxu0 }
  0xfc   :  { %v472_v56 = vadd.f32 %v1039_v54, %v893_v48  ;;  %v393_v57 = vpop.f32.mrb[3].mxu0 }
  0xfd   :  { %v471_v58 = vadd.f32 %v893_v48, %v393_v57  ;;  %1074 = vmatprep.mubr.msk.f32.mxu1 %vm516_vm5, %v485_v53 }
  0xfe   :  { %1075 = vmatmul.mubr.msk.f32.vlgmr.msra.gmra.mrb[0].mxu1 %vm516_vm5, %v486_v55  ;;  %v488_v61 = vmax.f32 %v472_v56, 0.0 }
  0xff   :  { %v487_v59 = vmax.f32 %v471_v58, 0.0  ;;  %v1042_v60 = vpop.f32.mrb[4].mxu0 }
 0x100   :  { %v474_v62 = vadd.f32 %v1042_v60, %v893_v48  ;;  %v403_v63 = vpop.f32.mrb[5].mxu0 }
 0x101   :  { %v473_v0 = vadd.f32 %v893_v48, %v403_v63  ;;  %1077 = vmatprep.mubr.msk.f32.mxu1 %vm516_vm5, %v487_v59 }
 0x102   :  { %1078 = vmatmul.mubr.msk.f32.gmra.mrb[2].mxu1 %vm516_vm5, %v488_v61  ;;  %v490_v3 = vmax.f32 %v474_v62, 0.0 }
 0x103   :  { %v489_v1 = vmax.f32 %v473_v0, 0.0  ;;  %v1045_v2 = vpop.f32.mrb[6].mxu0 }
 0x104   :  { %v476_v4 = vadd.f32 %v1045_v2, %v893_v48  ;;  %v413_v5 = vpop.f32.mrb[7].mxu0 }
 0x105   :  { %v475_v6 = vadd.f32 %v893_v48, %v413_v5  ;;  %1080 = vmatprep.mubr.msk.f32.mxu1 %vm516_vm5, %v489_v1 }
 0x106   :  { %1081 = vmatmul.mubr.msk.f32.gmra.mrb[4].mxu1 %vm516_vm5, %v490_v3  ;;  %v492_v9 = vmax.f32 %v476_v4, 0.0 }
 0x107   :  { %v491_v7 = vmax.f32 %v475_v6, 0.0  ;;  %v1048_v8 = vpop.f32.mrb[8].mxu0 }
 0x108   :  { %v478_v10 = vadd.f32 %v1048_v8, %v893_v48  ;;  %v423_v11 = vpop.f32.mrb[9].mxu0 }
 0x109   :  { %v477_v12 = vadd.f32 %v893_v48, %v423_v11  ;;  %1083 = vmatprep.mubr.msk.f32.mxu1 %vm516_vm5, %v491_v7 }
 0x10a   :  { %1084 = vmatmul.mubr.msk.f32.gmra.mrb[6].mxu1 %vm516_vm5, %v492_v9  ;;  %v494_v15 = vmax.f32 %v478_v10, 0.0 }
 0x10b   :  { %v493_v13 = vmax.f32 %v477_v12, 0.0  ;;  %v1051_v14 = vpop.f32.mrb[10].mxu0 }
 0x10c   :  { %v480_v16 = vadd.f32 %v1051_v14, %v893_v48  ;;  %v433_v17 = vpop.f32.mrb[11].mxu0 }
 0x10d   :  { %v479_v18 = vadd.f32 %v893_v48, %v433_v17  ;;  %1086 = vmatprep.mubr.msk.f32.mxu1 %vm516_vm5, %v493_v13 }
 0x10e   :  { %1087 = vmatmul.mubr.msk.f32.gmra.mrb[8].mxu1 %vm516_vm5, %v494_v15  ;;  %v496_v21 = vmax.f32 %v480_v16, 0.0 }
 0x10f   :  { %v495_v19 = vmax.f32 %v479_v18, 0.0  ;;  %v1054_v20 = vpop.f32.mrb[12].mxu0 }
 0x110   :  { %v482_v22 = vadd.f32 %v1054_v20, %v893_v48  ;;  %v443_v23 = vpop.f32.mrb[13].mxu0 }
 0x111   :  { %v481_v24 = vadd.f32 %v893_v48, %v443_v23  ;;  %1089 = vmatprep.mubr.msk.f32.mxu1 %vm516_vm5, %v495_v19 }
 0x112   :  { %1090 = vmatmul.mubr.msk.f32.gmra.mrb[10].mxu1 %vm516_vm5, %v496_v21  ;;  %v498_v27 = vmax.f32 %v482_v22, 0.0 }
 0x113   :  { %v497_v25 = vmax.f32 %v481_v24, 0.0  ;;  %v1057_v26 = vpop.f32.mrb[14].mxu0 }
 0x114   :  { %v484_v28 = vadd.f32 %v1057_v26, %v893_v48  ;;  %v453_v29 = vpop.f32.mrb[15].mxu0 }
 0x115   :  { %v483_v30 = vadd.f32 %v893_v48, %v453_v29  ;;  %1092 = vmatprep.mubr.msk.f32.mxu1 %vm516_vm5, %v497_v25 }
 0x116   :  { %1093 = vmatmul.mubr.msk.f32.gmra.mrb[12].mxu1 %vm516_vm5, %v498_v27  ;;  %v500_v32 = vmax.f32 %v484_v28, 0.0 }
 0x117   :  { %v499_v31 = vmax.f32 %v483_v30, 0.0 }
 0x119   :  { %1095 = vmatprep.mubr.msk.f32.mxu1 %vm516_vm5, %v499_v31  ;;  %v726_v31 = vld [vmem:[%s1495_s7] sm:$0x3] }
 0x11a   :  { %1096 = vmatmul.mubr.msk.f32.gmra.mrb[14].mxu1 %vm516_vm5, %v500_v32  ;;  %v731_v32 = vpop.permute.xlu0 %730 }
 0x11b   :  { %1130 = vmatprep.mubr.msk.f32.mxu1 %vm1211_vm6, %v1212_v34 }
 0x1d1   :  { %v1076_v38 = vpop.f32.mrb[0].mxu1 }
 0x1d2   :  { %v637_v39 = vadd.f32 %v1076_v38, %v894_v37  ;;  %v631_v40 = vpop.f32.mrb[1].mxu1 }
 0x1d3   :  { %v632_v41 = vadd.f32 %v894_v37, %v631_v40 }
 0x1d4   :  { %v711_v42 = vmax.f32 %v637_v39, 0.0 }
 0x1d5   :  { %v710_v43 = vmax.f32 %v632_v41, 0.0  ;;  %v1079_v44 = vpop.f32.mrb[2].mxu1 }
 0x1d6   :  { %v647_v45 = vadd.f32 %v1079_v44, %v894_v37  ;;  %v641_v46 = vpop.f32.mrb[3].mxu1 }
 0x1d7   :  { %v1156_v48 = vpack.c.bf16 %v711_v42, %v710_v43  ;;  %v642_v49 = vadd.f32 %v894_v37, %v641_v46 }
 0x1d8   :  { %v713_v50 = vmax.f32 %v647_v45, 0.0 }
 0x1d9   :  { %v712_v51 = vmax.f32 %v642_v49, 0.0  ;;  %v1082_v52 = vpop.f32.mrb[4].mxu1  ;;  %1158 = vmatpush3.bf16.xpose.msk.msra.mxu1 %vm1453_vm7, %v1156_v48 }
 0x1da   :  { %v657_v53 = vadd.f32 %v1082_v52, %v894_v37  ;;  %v651_v54 = vpop.f32.mrb[5].mxu1  ;;  %1159 = vmatprep.subr.bf16.mxu1 %v1210_v33 }
 0x1db   :  { %v1160_v55 = vpack.c.bf16 %v713_v50, %v712_v51  ;;  %v652_v56 = vadd.f32 %v894_v37, %v651_v54 }
 0x1dc   :  { %v715_v57 = vmax.f32 %v657_v53, 0.0 }
 0x1dd   :  { %v714_v58 = vmax.f32 %v652_v56, 0.0  ;;  %v1085_v59 = vpop.f32.mrb[6].mxu1 }
 0x1de   :  { %v667_v60 = vadd.f32 %v1085_v59, %v894_v37  ;;  %v661_v61 = vpop.f32.mrb[7].mxu1 }
 0x1df   :  { %v1164_v62 = vpack.c.bf16 %v715_v57, %v714_v58  ;;  %v662_v63 = vadd.f32 %v894_v37, %v661_v61 }
 0x1e0   :  { %v717_v0 = vmax.f32 %v667_v60, 0.0 }
 0x1e1   :  { %v716_v1 = vmax.f32 %v662_v63, 0.0  ;;  %v1088_v2 = vpop.f32.mrb[8].mxu1  ;;  %1162 = vmatpush3.bf16.xpose.msk.msra.mxu1 %vm1453_vm7, %v1160_v55 }
 0x1e2   :  { %v677_v3 = vadd.f32 %v1088_v2, %v894_v37  ;;  %v671_v4 = vpop.f32.mrb[9].mxu1  ;;  %1163 = vmatprep.subr.bf16.mxu1 %v1210_v33 }
 0x1e3   :  { %v1168_v5 = vpack.c.bf16 %v717_v0, %v716_v1  ;;  %v672_v6 = vadd.f32 %v894_v37, %v671_v4 }
 0x1e4   :  { %v719_v7 = vmax.f32 %v677_v3, 0.0 }
 0x1e5   :  { %v718_v8 = vmax.f32 %v672_v6, 0.0  ;;  %v1091_v9 = vpop.f32.mrb[10].mxu1 }
 0x1e6   :  { %v687_v10 = vadd.f32 %v1091_v9, %v894_v37  ;;  %v681_v11 = vpop.f32.mrb[11].mxu1 }
 0x1e7   :  { %v1172_v12 = vpack.c.bf16 %v719_v7, %v718_v8  ;;  %v682_v13 = vadd.f32 %v894_v37, %v681_v11 }
 0x1e8   :  { %v721_v14 = vmax.f32 %v687_v10, 0.0 }
 0x1e9   :  { %v720_v15 = vmax.f32 %v682_v13, 0.0  ;;  %v1094_v16 = vpop.f32.mrb[12].mxu1  ;;  %1166 = vmatpush3.bf16.xpose.msk.msra.mxu1 %vm1453_vm7, %v1164_v62 }
 0x1ea   :  { %v697_v17 = vadd.f32 %v1094_v16, %v894_v37  ;;  %v691_v18 = vpop.f32.mrb[13].mxu1  ;;  %1167 = vmatprep.subr.bf16.mxu1 %v1210_v33 }
 0x1eb   :  { %v1176_v19 = vpack.c.bf16 %v721_v14, %v720_v15  ;;  %v692_v20 = vadd.f32 %v894_v37, %v691_v18 }
 0x1ec   :  { %v723_v21 = vmax.f32 %v697_v17, 0.0 }
 0x1ed   :  { %v722_v22 = vmax.f32 %v692_v20, 0.0  ;;  %v1097_v23 = vpop.f32.mrb[14].mxu1 }
 0x1ee   :  { %v707_v24 = vadd.f32 %v1097_v23, %v894_v37  ;;  %v701_v25 = vpop.f32.mrb[15].mxu1 }
 0x1ef   :  { %v1180_v26 = vpack.c.bf16 %v723_v21, %v722_v22  ;;  %v702_v27 = vadd.f32 %v894_v37, %v701_v25 }
 0x1f0   :  { %v725_v28 = vmax.f32 %v707_v24, 0.0 }
 0x1f1   :  { %v724_v29 = vmax.f32 %v702_v27, 0.0  ;;  %1170 = vmatpush3.bf16.xpose.msk.msra.mxu1 %vm1453_vm7, %v1168_v5 }
 0x1f2   :  { %1171 = vmatprep.subr.bf16.mxu1 %v1210_v33 }
 0x1f3   :  { %v1184_v30 = vpack.c.bf16 %v725_v28, %v724_v29 }
 0x1f9   :  { %1174 = vmatpush3.bf16.xpose.msk.msra.mxu1 %vm1453_vm7, %v1172_v12 }
 0x1fa   :  { %1175 = vmatprep.subr.bf16.mxu1 %v1210_v33 }
 0x201   :  { %1178 = vmatpush3.bf16.xpose.msk.msra.mxu1 %vm1453_vm7, %v1176_v19 }
 0x202   :  { %1179 = vmatprep.subr.bf16.mxu1 %v1210_v33 }
 0x209   :  { %1182 = vmatpush3.bf16.xpose.msk.msra.mxu1 %vm1453_vm7, %v1180_v26 }
 0x20a   :  { %1183 = vmatprep.subr.bf16.mxu1 %v1210_v33 }
 0x211   :  { %1186 = vmatpush3.bf16.xpose.msk.msra.mxu1 %vm1453_vm7, %v1184_v30 }
 0x218   :  { %1131 = vmatmul.mubr.msk.f32.vlgmr.msra.gmra.mrb[16].mxu1 %vm516_vm5, %v726_v31 }
 0x2eb   :  { %v850_v34 = vpop.f32.mrb[16].mxu1 }
 0x2ec   :  { %v851_v35 = vadd.f32 %v850_v34, %v731_v32  ;;  %v1132_v36 = vpop.f32.mrb[17].mxu1 }
 0x2ee   :  { %854 = vst [vmem:[%s1496_s9] sm:$0x3] %v851_v35 }

// kernel: _critic_forward_impl.1
= control target key start
LH: loop header
LB: loop body
LE: loop exit
PB: predicated region body
PF: predicated region fallthrough
CT: control target
= control target key end

     0   :  { %vm116_vm0 = vcmask 1043456   ;;  %vm67_vm1 = vcmask 31744   ;;  %vm1209_vm2 = vmmov 1   ;;  %vm265_vm4 = vcmask 97280   ;;  %s1487_s3 = inlined_call_operand.vmem [shape: f32[4,64], index: 3, kind: input, shape index: {}]   ;;  %s1488_s1 = inlined_call_operand.vmem [shape: f32[128,4], index: 1, kind: input, shape index: {}]   ;;  %s1489_s2 = inlined_call_operand.vmem [shape: f32[12,64], index: 2, kind: input, shape index: {}]   ;;  %s1490_s5 = inlined_call_operand.vmem [shape: f32[64,64], index: 5, kind: input, shape index: {}]   ;;  %s1491_s0 = inlined_call_operand.vmem [shape: f32[128,12], index: 0, kind: input, shape index: {}]   ;;  %s1492_s4 = inlined_call_operand.vmem [shape: f32[1,64], index: 4, kind: input, shape index: {}]   ;;  %s1493_s8 = inlined_call_operand.vmem [shape: f32[2,1], index: 8, kind: input, shape index: {}]   ;;  %s1494_s6 = inlined_call_operand.vmem [shape: f32[1,64], index: 6, kind: input, shape index: {}]   ;;  %s1495_s7 = inlined_call_operand.vmem [shape: f32[2,64], index: 7, kind: input, shape index: {}]   ;;  %s1496_s9 = inlined_call_operand.vmem [shape: f32[2,128], index: 9, kind: output, shape index: {}]  }
   0x1   :  { %v66_v0 = vld [vmem:[%s1487_s3] sm:$0xf]  ;;  %v51_v2 = vld [vmem:[%s1488_s1 + $0x8] sm:$0xff]  ;;  %vm1134_vm3 = vmpackc.low %vm116_vm0, %vm1209_vm2  ;;  %vm516_vm5 = vcmask 523264   ;;  %vm1211_vm6 = vmmov 0  }
   0x2   :  { %v50_v1 = vld [vmem:[%s1488_s1] sm:$0xff]  ;;  %1004 = vmatprep.subr.msk.mxu0 %vm116_vm0, %v66_v0  ;;  %v49_v4 = vld [vmem:[%s1489_s2 + $0x8] sm:$0xf]  ;;  %v52_v6 = vld [vmem:[%s1488_s1 + $0x10] sm:$0xff] }
   0x3   :  { %1006 = vmatprep.mubr.msk.f32.mxu0 %vm67_vm1, %v50_v1  ;;  %v48_v3 = vld [vmem:[%s1489_s2] sm:$0xff]  ;;  %1005 = vmatpush3.msk.msra.mxu0 %vm116_vm0, %v66_v0  ;;  %v53_v7 = vld [vmem:[%s1488_s1 + $0x18] sm:$0xff]  ;;  %v55_v9 = vld [vmem:[%s1488_s1 + $0x28] sm:$0xff] }
   0x4   :  { %v1133_v5 = vpack.c.bf16 %v49_v4, %v48_v3  ;;  %1007 = vmatmul.mubr.msk.f32.vlgmr.msra.gmra.mrb[0].mxu0 %vm67_vm1, %v51_v2  ;;  %v54_v8 = vld [vmem:[%s1488_s1 + $0x20] sm:$0xff]  ;;  %v56_v10 = vld [vmem:[%s1488_s1 + $0x30] sm:$0xff]  ;;  %v57_v11 = vld [vmem:[%s1488_s1 + $0x38] sm:$0xff] }
   0x5   :  { %1009 = vmatprep.mubr.msk.f32.mxu0 %vm67_vm1, %v52_v6  ;;  %v501_v12 = vld [vmem:[%s1490_s5] sm:$0xff]  ;;  %v502_v13 = vld [vmem:[%s1490_s5 + $0x8] sm:$0xff]  ;;  %v503_v14 = vld [vmem:[%s1490_s5 + $0x10] sm:$0xff] }
   0x6   :  { %1135 = vmatprep.subr.msk.bf16.mxu0 %vm1134_vm3, %v1133_v5  ;;  %v58_v15 = vld [vmem:[%s1488_s1 + $0x40] sm:$0xff]  ;;  %v1139_v16 = vpack.c.bf16 %v502_v13, %v501_v12  ;;  %v504_v17 = vld [vmem:[%s1490_s5 + $0x18] sm:$0xff]  ;;  %v506_v20 = vld [vmem:[%s1490_s5 + $0x28] sm:$0xff] }
   0x7   :  { %1138 = vmatpush3.bf16.msk.msra.mxu0 %vm1134_vm3, %v1133_v5  ;;  %v1143_v18 = vpack.c.bf16 %v504_v17, %v503_v14  ;;  %v505_v19 = vld [vmem:[%s1490_s5 + $0x20] sm:$0xff]  ;;  %v59_v21 = vld [vmem:[%s1488_s1 + $0x48] sm:$0xff]  ;;  %v60_v22 = vld [vmem:[%s1488_s1 + $0x50] sm:$0xff] }
   0x8   :  { %1010 = vmatmul.mubr.msk.f32.gmra.mrb[2].mxu0 %vm67_vm1, %v53_v7  ;;  %1140 = vmatprep.subr.bf16.mxu1 %v1139_v16  ;;  %v1147_v23 = vpack.c.bf16 %v506_v20, %v505_v19  ;;  %v61_v24 = vld [vmem:[%s1488_s1 + $0x58] sm:$0xff]  ;;  %v62_v25 = vld [vmem:[%s1488_s1 + $0x60] sm:$0xff]  ;;  %v63_v26 = vld [vmem:[%s1488_s1 + $0x68] sm:$0xff] }
   0x9   :  { %1012 = vmatprep.mubr.msk.f32.mxu0 %vm67_vm1, %v54_v8  ;;  %1142 = vmatpush3.bf16.msra.mxu1 %v1139_v16  ;;  %v64_v27 = vld [vmem:[%s1488_s1 + $0x70] sm:$0xff]  ;;  %v65_v28 = vld [vmem:[%s1488_s1 + $0x78] sm:$0xff]  ;;  %v32_v29 = vld [vmem:[%s1491_s0] sm:$0xff] }
   0xa   :  { %1144 = vmatprep.subr.bf16.mxu1 %v1143_v18  ;;  %v33_v30 = vld [vmem:[%s1491_s0 + $0x8] sm:$0xff]  ;;  %v34_v31 = vld [vmem:[%s1491_s0 + $0x10] sm:$0xff]  ;;  %v35_v32 = vld [vmem:[%s1491_s0 + $0x18] sm:$0xff] }
   0xb   :  { %v36_v33 = vld [vmem:[%s1491_s0 + $0x20] sm:$0xff]  ;;  %v37_v34 = vld [vmem:[%s1491_s0 + $0x28] sm:$0xff]  ;;  %v38_v35 = vld [vmem:[%s1491_s0 + $0x30] sm:$0xff] }
   0xc   :  { %1013 = vmatmul.mubr.msk.f32.gmra.mrb[4].mxu0 %vm67_vm1, %v55_v9  ;;  %v39_v36 = vld [vmem:[%s1491_s0 + $0x38] sm:$0xff]  ;;  %v40_v37 = vld [vmem:[%s1491_s0 + $0x40] sm:$0xff]  ;;  %v41_v38 = vld [vmem:[%s1491_s0 + $0x48] sm:$0xff] }
   0xd   :  { %1015 = vmatprep.mubr.msk.f32.mxu0 %vm67_vm1, %v56_v10  ;;  %1146 = vmatpush3.bf16.msra.mxu1 %v1143_v18  ;;  %v42_v39 = vld [vmem:[%s1491_s0 + $0x50] sm:$0xff]  ;;  %v43_v40 = vld [vmem:[%s1491_s0 + $0x58] sm:$0xff]  ;;  %v44_v41 = vld [vmem:[%s1491_s0 + $0x60] sm:$0xff] }
   0xe   :  { %1148 = vmatprep.subr.bf16.mxu1 %v1147_v23  ;;  %v45_v42 = vld [vmem:[%s1491_s0 + $0x68] sm:$0xff]  ;;  %v46_v43 = vld [vmem:[%s1491_s0 + $0x70] sm:$0xff]  ;;  %v47_v44 = vld [vmem:[%s1491_s0 + $0x78] sm:$0xff] }
   0xf   :  { %v507_v45 = vld [vmem:[%s1490_s5 + $0x30] sm:$0xff]  ;;  %v508_v46 = vld [vmem:[%s1490_s5 + $0x38] sm:$0xff]  ;;  %v893_v48 = vld [vmem:[%s1492_s4] ss:$0 sm:$0xff] }
  0x10   :  { %1016 = vmatmul.mubr.msk.f32.gmra.mrb[6].mxu0 %vm67_vm1, %v57_v11  ;;  %v1151_v47 = vpack.c.bf16 %v508_v46, %v507_v45  ;;  %vm1453_vm7 = vmpackc.low %vm516_vm5, %vm516_vm5 }
  0x11   :  { %1018 = vmatprep.mubr.msk.f32.mxu0 %vm67_vm1, %v58_v15  ;;  %1150 = vmatpush3.bf16.msra.mxu1 %v1147_v23 }
  0x12   :  { %1152 = vmatprep.subr.bf16.mxu1 %v1151_v47 }
  0x14   :  { %1019 = vmatmul.mubr.msk.f32.gmra.mrb[8].mxu0 %vm67_vm1, %v59_v21 }
  0x15   :  { %1021 = vmatprep.mubr.msk.f32.mxu0 %vm67_vm1, %v60_v22  ;;  %1154 = vmatpush3.bf16.msra.mxu1 %v1151_v47 }
  0x18   :  { %1022 = vmatmul.mubr.msk.f32.gmra.mrb[10].mxu0 %vm67_vm1, %v61_v24 }
  0x19   :  { %1024 = vmatprep.mubr.msk.f32.mxu0 %vm67_vm1, %v62_v25 }
  0x1c   :  { %1025 = vmatmul.mubr.msk.f32.gmra.mrb[12].mxu0 %vm67_vm1, %v63_v26 }
  0x1d   :  { %1027 = vmatprep.mubr.msk.f32.mxu0 %vm67_vm1, %v64_v27 }
  0x20   :  { %1028 = vmatmul.mubr.msk.f32.gmra.mrb[14].mxu0 %vm67_vm1, %v65_v28 }
  0x21   :  { %1034 = vmatprep.mubr.msk.f32.mxu0 %vm265_vm4, %v32_v29 }
  0x24   :  { %1035 = vmatmul.mubr.msk.f32.vlgmr.msra.gmra.mrb[0].mxu0 %vm265_vm4, %v33_v30 }
  0x25   :  { %1037 = vmatprep.mubr.msk.f32.mxu0 %vm265_vm4, %v34_v31 }
  0x28   :  { %1038 = vmatmul.mubr.msk.f32.gmra.mrb[2].mxu0 %vm265_vm4, %v35_v32 }
  0x29   :  { %1040 = vmatprep.mubr.msk.f32.mxu0 %vm265_vm4, %v36_v33  ;;  %v1210_v33 = vmov 0.0|0.0  }
  0x2a   :  { %1155 = vmatprep.subr.bf16.mxu1 %v1210_v33 }
  0x2c   :  { %1041 = vmatmul.mubr.msk.f32.gmra.mrb[4].mxu0 %vm265_vm4, %v37_v34  ;;  %v1212_v34 = vmov 0.0  }
  0x2d   :  { %1043 = vmatprep.mubr.msk.f32.mxu0 %vm265_vm4, %v38_v35  ;;  %v1213_v35 = vmov 0  }
  0x2e   :  { %1208 = vset.pattern.permute.xlu0 %v1213_v35 }
  0x30   :  { %1044 = vmatmul.mubr.msk.f32.gmra.mrb[6].mxu0 %vm265_vm4, %v39_v36  ;;  %v727_v36 = vld [vmem:[%s1493_s8] sm:$0x3] }
  0x31   :  { %1046 = vmatprep.mubr.msk.f32.mxu0 %vm265_vm4, %v40_v37  ;;  %730 = vperm.xlu0 %1208, %v727_v36   ;;  %v894_v37 = vld [vmem:[%s1494_s6] ss:$0 sm:$0xff] }
  0x34   :  { %1047 = vmatmul.mubr.msk.f32.gmra.mrb[8].mxu0 %vm265_vm4, %v41_v38 }
  0x35   :  { %1049 = vmatprep.mubr.msk.f32.mxu0 %vm265_vm4, %v42_v39 }
  0x38   :  { %1050 = vmatmul.mubr.msk.f32.gmra.mrb[10].mxu0 %vm265_vm4, %v43_v40 }
  0x39   :  { %1052 = vmatprep.mubr.msk.f32.mxu0 %vm265_vm4, %v44_v41 }
  0x3c   :  { %1053 = vmatmul.mubr.msk.f32.gmra.mrb[12].mxu0 %vm265_vm4, %v45_v42 }
  0x3d   :  { %1055 = vmatprep.mubr.msk.f32.mxu0 %vm265_vm4, %v46_v43 }
  0x40   :  { %1056 = vmatmul.mubr.msk.f32.gmra.mrb[14].mxu0 %vm265_vm4, %v47_v44 }
  0xf7   :  { %v1036_v49 = vpop.f32.mrb[0].mxu0 }
  0xf8   :  { %v470_v50 = vadd.f32 %v1036_v49, %v893_v48  ;;  %v383_v51 = vpop.f32.mrb[1].mxu0 }
  0xf9   :  { %v469_v52 = vadd.f32 %v893_v48, %v383_v51 }
  0xfa   :  { %v486_v55 = vmax.f32 %v470_v50, 0.0 }
  0xfb   :  { %v485_v53 = vmax.f32 %v469_v52, 0.0  ;;  %v1039_v54 = vpop.f32.mrb[2].mxu0 }
  0xfc   :  { %v472_v56 = vadd.f32 %v1039_v54, %v893_v48  ;;  %v393_v57 = vpop.f32.mrb[3].mxu0 }
  0xfd   :  { %v471_v58 = vadd.f32 %v893_v48, %v393_v57  ;;  %1074 = vmatprep.mubr.msk.f32.mxu1 %vm516_vm5, %v485_v53 }
  0xfe   :  { %1075 = vmatmul.mubr.msk.f32.vlgmr.msra.gmra.mrb[0].mxu1 %vm516_vm5, %v486_v55  ;;  %v488_v61 = vmax.f32 %v472_v56, 0.0 }
  0xff   :  { %v487_v59 = vmax.f32 %v471_v58, 0.0  ;;  %v1042_v60 = vpop.f32.mrb[4].mxu0 }
 0x100   :  { %v474_v62 = vadd.f32 %v1042_v60, %v893_v48  ;;  %v403_v63 = vpop.f32.mrb[5].mxu0 }
 0x101   :  { %v473_v0 = vadd.f32 %v893_v48, %v403_v63  ;;  %1077 = vmatprep.mubr.msk.f32.mxu1 %vm516_vm5, %v487_v59 }
 0x102   :  { %1078 = vmatmul.mubr.msk.f32.gmra.mrb[2].mxu1 %vm516_vm5, %v488_v61  ;;  %v490_v3 = vmax.f32 %v474_v62, 0.0 }
 0x103   :  { %v489_v1 = vmax.f32 %v473_v0, 0.0  ;;  %v1045_v2 = vpop.f32.mrb[6].mxu0 }
 0x104   :  { %v476_v4 = vadd.f32 %v1045_v2, %v893_v48  ;;  %v413_v5 = vpop.f32.mrb[7].mxu0 }
 0x105   :  { %v475_v6 = vadd.f32 %v893_v48, %v413_v5  ;;  %1080 = vmatprep.mubr.msk.f32.mxu1 %vm516_vm5, %v489_v1 }
 0x106   :  { %1081 = vmatmul.mubr.msk.f32.gmra.mrb[4].mxu1 %vm516_vm5, %v490_v3  ;;  %v492_v9 = vmax.f32 %v476_v4, 0.0 }
 0x107   :  { %v491_v7 = vmax.f32 %v475_v6, 0.0  ;;  %v1048_v8 = vpop.f32.mrb[8].mxu0 }
 0x108   :  { %v478_v10 = vadd.f32 %v1048_v8, %v893_v48  ;;  %v423_v11 = vpop.f32.mrb[9].mxu0 }
 0x109   :  { %v477_v12 = vadd.f32 %v893_v48, %v423_v11  ;;  %1083 = vmatprep.mubr.msk.f32.mxu1 %vm516_vm5, %v491_v7 }
 0x10a   :  { %1084 = vmatmul.mubr.msk.f32.gmra.mrb[6].mxu1 %vm516_vm5, %v492_v9  ;;  %v494_v15 = vmax.f32 %v478_v10, 0.0 }
 0x10b   :  { %v493_v13 = vmax.f32 %v477_v12, 0.0  ;;  %v1051_v14 = vpop.f32.mrb[10].mxu0 }
 0x10c   :  { %v480_v16 = vadd.f32 %v1051_v14, %v893_v48  ;;  %v433_v17 = vpop.f32.mrb[11].mxu0 }
 0x10d   :  { %v479_v18 = vadd.f32 %v893_v48, %v433_v17  ;;  %1086 = vmatprep.mubr.msk.f32.mxu1 %vm516_vm5, %v493_v13 }
 0x10e   :  { %1087 = vmatmul.mubr.msk.f32.gmra.mrb[8].mxu1 %vm516_vm5, %v494_v15  ;;  %v496_v21 = vmax.f32 %v480_v16, 0.0 }
 0x10f   :  { %v495_v19 = vmax.f32 %v479_v18, 0.0  ;;  %v1054_v20 = vpop.f32.mrb[12].mxu0 }
 0x110   :  { %v482_v22 = vadd.f32 %v1054_v20, %v893_v48  ;;  %v443_v23 = vpop.f32.mrb[13].mxu0 }
 0x111   :  { %v481_v24 = vadd.f32 %v893_v48, %v443_v23  ;;  %1089 = vmatprep.mubr.msk.f32.mxu1 %vm516_vm5, %v495_v19 }
 0x112   :  { %1090 = vmatmul.mubr.msk.f32.gmra.mrb[10].mxu1 %vm516_vm5, %v496_v21  ;;  %v498_v27 = vmax.f32 %v482_v22, 0.0 }
 0x113   :  { %v497_v25 = vmax.f32 %v481_v24, 0.0  ;;  %v1057_v26 = vpop.f32.mrb[14].mxu0 }
 0x114   :  { %v484_v28 = vadd.f32 %v1057_v26, %v893_v48  ;;  %v453_v29 = vpop.f32.mrb[15].mxu0 }
 0x115   :  { %v483_v30 = vadd.f32 %v893_v48, %v453_v29  ;;  %1092 = vmatprep.mubr.msk.f32.mxu1 %vm516_vm5, %v497_v25 }
 0x116   :  { %1093 = vmatmul.mubr.msk.f32.gmra.mrb[12].mxu1 %vm516_vm5, %v498_v27  ;;  %v500_v32 = vmax.f32 %v484_v28, 0.0 }
 0x117   :  { %v499_v31 = vmax.f32 %v483_v30, 0.0 }
 0x119   :  { %1095 = vmatprep.mubr.msk.f32.mxu1 %vm516_vm5, %v499_v31  ;;  %v726_v31 = vld [vmem:[%s1495_s7] sm:$0x3] }
 0x11a   :  { %1096 = vmatmul.mubr.msk.f32.gmra.mrb[14].mxu1 %vm516_vm5, %v500_v32  ;;  %v731_v32 = vpop.permute.xlu0 %730 }
 0x11b   :  { %1130 = vmatprep.mubr.msk.f32.mxu1 %vm1211_vm6, %v1212_v34 }
 0x1d1   :  { %v1076_v38 = vpop.f32.mrb[0].mxu1 }
 0x1d2   :  { %v637_v39 = vadd.f32 %v1076_v38, %v894_v37  ;;  %v631_v40 = vpop.f32.mrb[1].mxu1 }
 0x1d3   :  { %v632_v41 = vadd.f32 %v894_v37, %v631_v40 }
 0x1d4   :  { %v711_v42 = vmax.f32 %v637_v39, 0.0 }
 0x1d5   :  { %v710_v43 = vmax.f32 %v632_v41, 0.0  ;;  %v1079_v44 = vpop.f32.mrb[2].mxu1 }
 0x1d6   :  { %v647_v45 = vadd.f32 %v1079_v44, %v894_v37  ;;  %v641_v46 = vpop.f32.mrb[3].mxu1 }
 0x1d7   :  { %v1156_v48 = vpack.c.bf16 %v711_v42, %v710_v43  ;;  %v642_v49 = vadd.f32 %v894_v37, %v641_v46 }
 0x1d8   :  { %v713_v50 = vmax.f32 %v647_v45, 0.0 }
 0x1d9   :  { %v712_v51 = vmax.f32 %v642_v49, 0.0  ;;  %v1082_v52 = vpop.f32.mrb[4].mxu1  ;;  %1158 = vmatpush3.bf16.xpose.msk.msra.mxu1 %vm1453_vm7, %v1156_v48 }
 0x1da   :  { %v657_v53 = vadd.f32 %v1082_v52, %v894_v37  ;;  %v651_v54 = vpop.f32.mrb[5].mxu1  ;;  %1159 = vmatprep.subr.bf16.mxu1 %v1210_v33 }
 0x1db   :  { %v1160_v55 = vpack.c.bf16 %v713_v50, %v712_v51  ;;  %v652_v56 = vadd.f32 %v894_v37, %v651_v54 }
 0x1dc   :  { %v715_v57 = vmax.f32 %v657_v53, 0.0 }
 0x1dd   :  { %v714_v58 = vmax.f32 %v652_v56, 0.0  ;;  %v1085_v59 = vpop.f32.mrb[6].mxu1 }
 0x1de   :  { %v667_v60 = vadd.f32 %v1085_v59, %v894_v37  ;;  %v661_v61 = vpop.f32.mrb[7].mxu1 }
 0x1df   :  { %v1164_v62 = vpack.c.bf16 %v715_v57, %v714_v58  ;;  %v662_v63 = vadd.f32 %v894_v37, %v661_v61 }
 0x1e0   :  { %v717_v0 = vmax.f32 %v667_v60, 0.0 }
 0x1e1   :  { %v716_v1 = vmax.f32 %v662_v63, 0.0  ;;  %v1088_v2 = vpop.f32.mrb[8].mxu1  ;;  %1162 = vmatpush3.bf16.xpose.msk.msra.mxu1 %vm1453_vm7, %v1160_v55 }
 0x1e2   :  { %v677_v3 = vadd.f32 %v1088_v2, %v894_v37  ;;  %v671_v4 = vpop.f32.mrb[9].mxu1  ;;  %1163 = vmatprep.subr.bf16.mxu1 %v1210_v33 }
 0x1e3   :  { %v1168_v5 = vpack.c.bf16 %v717_v0, %v716_v1  ;;  %v672_v6 = vadd.f32 %v894_v37, %v671_v4 }
 0x1e4   :  { %v719_v7 = vmax.f32 %v677_v3, 0.0 }
 0x1e5   :  { %v718_v8 = vmax.f32 %v672_v6, 0.0  ;;  %v1091_v9 = vpop.f32.mrb[10].mxu1 }
 0x1e6   :  { %v687_v10 = vadd.f32 %v1091_v9, %v894_v37  ;;  %v681_v11 = vpop.f32.mrb[11].mxu1 }
 0x1e7   :  { %v1172_v12 = vpack.c.bf16 %v719_v7, %v718_v8  ;;  %v682_v13 = vadd.f32 %v894_v37, %v681_v11 }
 0x1e8   :  { %v721_v14 = vmax.f32 %v687_v10, 0.0 }
 0x1e9   :  { %v720_v15 = vmax.f32 %v682_v13, 0.0  ;;  %v1094_v16 = vpop.f32.mrb[12].mxu1  ;;  %1166 = vmatpush3.bf16.xpose.msk.msra.mxu1 %vm1453_vm7, %v1164_v62 }
 0x1ea   :  { %v697_v17 = vadd.f32 %v1094_v16, %v894_v37  ;;  %v691_v18 = vpop.f32.mrb[13].mxu1  ;;  %1167 = vmatprep.subr.bf16.mxu1 %v1210_v33 }
 0x1eb   :  { %v1176_v19 = vpack.c.bf16 %v721_v14, %v720_v15  ;;  %v692_v20 = vadd.f32 %v894_v37, %v691_v18 }
 0x1ec   :  { %v723_v21 = vmax.f32 %v697_v17, 0.0 }
 0x1ed   :  { %v722_v22 = vmax.f32 %v692_v20, 0.0  ;;  %v1097_v23 = vpop.f32.mrb[14].mxu1 }
 0x1ee   :  { %v707_v24 = vadd.f32 %v1097_v23, %v894_v37  ;;  %v701_v25 = vpop.f32.mrb[15].mxu1 }
 0x1ef   :  { %v1180_v26 = vpack.c.bf16 %v723_v21, %v722_v22  ;;  %v702_v27 = vadd.f32 %v894_v37, %v701_v25 }
 0x1f0   :  { %v725_v28 = vmax.f32 %v707_v24, 0.0 }
 0x1f1   :  { %v724_v29 = vmax.f32 %v702_v27, 0.0  ;;  %1170 = vmatpush3.bf16.xpose.msk.msra.mxu1 %vm1453_vm7, %v1168_v5 }
 0x1f2   :  { %1171 = vmatprep.subr.bf16.mxu1 %v1210_v33 }
 0x1f3   :  { %v1184_v30 = vpack.c.bf16 %v725_v28, %v724_v29 }
 0x1f9   :  { %1174 = vmatpush3.bf16.xpose.msk.msra.mxu1 %vm1453_vm7, %v1172_v12 }
 0x1fa   :  { %1175 = vmatprep.subr.bf16.mxu1 %v1210_v33 }
 0x201   :  { %1178 = vmatpush3.bf16.xpose.msk.msra.mxu1 %vm1453_vm7, %v1176_v19 }
 0x202   :  { %1179 = vmatprep.subr.bf16.mxu1 %v1210_v33 }
 0x209   :  { %1182 = vmatpush3.bf16.xpose.msk.msra.mxu1 %vm1453_vm7, %v1180_v26 }
 0x20a   :  { %1183 = vmatprep.subr.bf16.mxu1 %v1210_v33 }
 0x211   :  { %1186 = vmatpush3.bf16.xpose.msk.msra.mxu1 %vm1453_vm7, %v1184_v30 }
 0x218   :  { %1131 = vmatmul.mubr.msk.f32.vlgmr.msra.gmra.mrb[16].mxu1 %vm516_vm5, %v726_v31 }
 0x2eb   :  { %v850_v34 = vpop.f32.mrb[16].mxu1 }
 0x2ec   :  { %v851_v35 = vadd.f32 %v850_v34, %v731_v32  ;;  %v1132_v36 = vpop.f32.mrb[17].mxu1 }
 0x2ee   :  { %854 = vst [vmem:[%s1496_s9] sm:$0x3] %v851_v35 }

</bundles_post_ra>
